<compile_context>
chip_gen: v7x
topology: tpu7x:2x2x1
jax: 0.10.0
libtpu: 0.0.40
codegen_flags: <defaults>
</compile_context>

<pallas_src>
import jax
import jax.numpy as jnp
from jax.experimental import pallas as pl
from jax.experimental.pallas import tpu as pltpu


_LANE = 128
_MAX_COLS = 2048                          # lane-dense slab width (multiple of 128)
_TARGET_BLOCK_BYTES = 4 * 1024 * 1024     # ~4 MiB/block; x2 bufs x2 arrays = 16 MiB VMEM
_MIN_PIPELINE_BYTES = 256 * 1024          # slabs above this get >= _MIN_GRID blocks
_MIN_GRID = 4                             # in/out DMA overlap + v7x dual-TC sharding
_VMEM_LIMIT_BYTES = 32 * 1024 * 1024      # well under physical VMEM on v5e/v6e/v7x


# ---------------------------------------------------------------------------
# Pallas kernel: straight VMEM tile copy (the only possible "work" of view)
# ---------------------------------------------------------------------------
def _copy_kernel(x_ref, o_ref):
    o_ref[...] = x_ref[...]


def _largest_divisor(n, cap, step):
    """Largest d with d % step == 0, d <= cap and n % d == 0 (None if none)."""
    d = (min(cap, n) // step) * step
    while d >= step:
        if n % d == 0:
            return d
        d -= step
    return None


def _pick_block_rows(rows, row_bytes, sub):
    """Choose the row-block size for the (rows, cols) copy slab."""
    if rows <= sub:
        return rows
    total_bytes = rows * row_bytes

    # VMEM budget cap (multiple of the packed sublane count).
    cap_rows = max(sub, (_TARGET_BLOCK_BYTES // row_bytes) // sub * sub)

    # Pipeline / megacore: force >= _MIN_GRID blocks for slabs worth
    # overlapping (writeback of block i behind fetch of block i+1; two
    # TensorCores on v7x via the "parallel" grid axis).
    if total_bytes >= _MIN_PIPELINE_BYTES:
        per_block = max(sub, (rows // _MIN_GRID) // sub * sub)
        cap_rows = min(cap_rows, per_block)

    cap_rows = min(cap_rows, max(sub, (rows // sub) * sub))

    # Prefer an exact divisor (no masked edge block), but never let the search
    # collapse the block on awkward factorizations: one masked edge block is
    # far cheaper than tiny blocks everywhere (per-step overhead dominates).
    exact = _largest_divisor(rows, cap_rows, sub)
    if exact is not None and 2 * exact >= cap_rows:
        return exact
    return cap_rows


def _pallas_flat_copy(flat):
    """Copy a 1-D array (len % 128 == 0) through a lane-dense Pallas TPU copy."""
    total = flat.shape[0]
    itemsize = flat.dtype.itemsize
    # Sub-32-bit dtypes pack along sublanes: keep row blocks full-vreg sized.
    packing = max(1, 4 // itemsize)
    sub = 8 * packing

    # Lane-dense 2D slab: cols is a wide multiple of 128 that divides `total`
    # exactly -> no pad and no trailing slice (single HBM read + write).
    cols = _largest_divisor(total, _MAX_COLS, _LANE)
    rows = total // cols
    x2d = flat.reshape(rows, cols)

    block_rows = _pick_block_rows(rows, cols * itemsize, sub)
    grid = (pl.cdiv(rows, block_rows),)

    out2d = pl.pallas_call(
        _copy_kernel,
        out_shape=jax.ShapeDtypeStruct((rows, cols), flat.dtype),
        grid=grid,
        in_specs=[pl.BlockSpec((block_rows, cols), lambda i: (i, 0))],
        out_specs=pl.BlockSpec((block_rows, cols), lambda i: (i, 0)),
        compiler_params=pltpu.CompilerParams(
            dimension_semantics=("parallel",),
            vmem_limit_bytes=_VMEM_LIMIT_BYTES,
        ),
        cost_estimate=pl.CostEstimate(
            flops=0, transcendentals=0, bytes_accessed=2 * total * itemsize
        ),
    )(x2d)

    return out2d.reshape(-1)


def _resolve_shape(shape, total):
    """Replicate torch.view's handling of a single -1 dimension."""
    shape = list(shape)
    if shape.count(-1) > 1:
        raise ValueError("only one dimension can be inferred")
    if -1 in shape:
        known = 1
        for s in shape:
            if s != -1:
                known *= s
        shape[shape.index(-1)] = total // known
    prod = 1
    for s in shape:
        prod *= s
    if prod != total:
        raise ValueError(f"shape {shape} is invalid for input of size {total}")
    return tuple(shape)


class View:
    """JAX/Pallas equivalent of the PyTorch `View` module.

    Default path is a metadata-only reshape (exactly torch's contiguous
    .view, zero HBM traffic).  `materialize=True` forces a physically fresh
    buffer via the Pallas bandwidth-copy kernel.
    """

    def __init__(self, shape, materialize=False):
        self.shape = tuple(shape)
        self.materialize = materialize

    def __call__(self, x):
        total = 1
        for s in x.shape:
            total *= s
        out_shape = _resolve_shape(self.shape, total)

        # Metadata-only path (the correct torch-.view equivalent) for the
        # default case and for lane-misaligned / empty tensors where a
        # pad+slice round-trip would only add HBM traffic.
        if (not self.materialize) or total == 0 or total % _LANE != 0:
            return jnp.reshape(x, out_shape)

        # Row-major flatten (matches torch contiguous .view semantics),
        # Pallas copy, then metadata-only reinterpretation.
        flat = jnp.reshape(x, (-1,))
        copied = _pallas_flat_copy(flat)
        return jnp.reshape(copied, out_shape)


if __name__ == "__main__":
    key = jax.random.PRNGKey(0)
    # Small shapes consistent with how View is used in RegretNet
    # (flattening a (batch, n_agents, n_items) allocation tensor).
    x = jax.random.normal(key, (2, 4, 16, 16), dtype=jnp.float32)

    # Default path: metadata-only reshape (zero HBM traffic).
    out = jax.block_until_ready(View((2, -1))(x))
    assert out.shape == (2, 1024), out.shape
    assert out.dtype == x.dtype
    assert bool(jnp.array_equal(out, x.reshape(2, -1)))

    # Materialized path: Pallas bandwidth-copy kernel (small slab, 1 block).
    out_m = jax.block_until_ready(View((2, -1), materialize=True)(x))
    assert out_m.shape == (2, 1024) and out_m.dtype == x.dtype
    assert bool(jnp.array_equal(out_m, x.reshape(2, -1)))

    # Medium slab: exercises the multi-block pipelined grid (>= 4 blocks,
    # lane-dense 2048-wide tiles, in/out DMA overlap).
    xm = jax.random.normal(jax.random.PRNGKey(0), (32, 8, 16, 16), dtype=jnp.float32)
    out_mb = jax.block_until_ready(View((-1, 64), materialize=True)(xm))
    assert out_mb.shape == (1024, 64)
    assert bool(jnp.array_equal(out_mb, xm.reshape(-1, 64)))

    # Packed-dtype path (bf16): dtype-aware sublane blocking.
    xb = x.astype(jnp.bfloat16)
    out_b = jax.block_until_ready(View((8, -1), materialize=True)(xb))
    assert out_b.shape == (8, 256) and out_b.dtype == jnp.bfloat16
    assert bool(jnp.array_equal(out_b, xb.reshape(8, -1)))

    # Lane-misaligned fallback (metadata-only, matching torch .view).
    xs = jax.random.normal(jax.random.PRNGKey(0), (3, 5), dtype=jnp.float32)
    out_s = jax.block_until_ready(View((5, 3), materialize=True)(xs))
    assert out_s.shape == (5, 3)
    assert bool(jnp.array_equal(out_s, xs.reshape(5, 3)))

    print("KERNEL_OK")
</pallas_src>

<mosaic_0001>
module attributes {stable_mosaic.version = 11 : i64} {
  func.func @_copy_kernel(%arg0: i32, %arg1: memref<1x2048xf32, #tpu.memory_space<vmem>>, %arg2: memref<1x2048xf32, #tpu.memory_space<vmem>>) attributes {dimension_semantics = [#tpu.dimension_semantics<parallel>], iteration_bounds = array<i64: 1>, scalar_prefetch = 0 : i64, scratch_operands = 0 : i64, tpu.core_type = #tpu.core_type<tc>, window_params = [{transform_indices = @transform_0, window_bounds = array<i64: 1, 2048>}, {transform_indices = @transform_1, window_bounds = array<i64: 1, 2048>}]} {
    %c0 = arith.constant 0 : index
    %c0_0 = arith.constant 0 : index
    %0 = vector.load %arg1[%c0, %c0_0] : memref<1x2048xf32, #tpu.memory_space<vmem>>, vector<1x2048xf32>
    %c0_1 = arith.constant 0 : index
    %c0_2 = arith.constant 0 : index
    %1 = vector.load %arg2[%c0_1, %c0_2] : memref<1x2048xf32, #tpu.memory_space<vmem>>, vector<1x2048xf32>
    tpu.vector_store %arg2[%c0_1, %c0_2], %0 {strides = array<i32>} : memref<1x2048xf32, #tpu.memory_space<vmem>>, vector<1x2048xf32>,
    return
  }
  func.func @transform_0(%arg0: i32) -> (i32, i32) {
    %c0_i32 = arith.constant 0 : i32
    %c0_i32_0 = arith.constant 0 : i32
    return %arg0, %c0_i32 : i32, i32
  }
  func.func @transform_1(%arg0: i32) -> (i32, i32) {
    %c0_i32 = arith.constant 0 : i32
    %c0_i32_0 = arith.constant 0 : i32
    return %arg0, %c0_i32 : i32, i32
  }
}

</mosaic_0001>

<bundles_post_ra>
// kernel: tpu_custom_call.1
= control target key start
LH: loop header
LB: loop body
LE: loop exit
PB: predicated region body
PF: predicated region fallthrough
CT: control target
= control target key end

     0   :  { %6 = vsyncpa [#allocation3], 0  ;;  %s126_s0 = inlined_call_operand.hbm [shape: f32[1,2048], index: 0, kind: input, shape index: {}]   ;;  %s127_s1 = inlined_call_operand.hbm [shape: f32[1,2048], index: 1, kind: output, shape index: {}]  }
   0x1   :  { %7 = vsyncpa [#allocation4], 0  ;;  %s90_s6 = smov [#allocation2]   ;;  %s42_s10 = scalar_lea.hbm %s126_s0, 256 }
   0x2   :  { %s14_s7 = sshll.u32 %s90_s6, 4  ;;  %p43_p0 = scmp.ne.s32.totalorder %s126_s0, %s42_s10  ;;  %s15_s7 = int_to_ptr.vmem [resolvable:$true] %s14_s7 }
   0x3   :  { %p46_p1 = scmp.lt.u32.totalorder %s42_s10, %s126_s0 }
   0x5   :  { %p48_p2 = pnand %p46_p1, %p43_p0 }
   0x7   :  { %51 = shalt.err (!%p48_p2)
}
   0x8   :  { %s52_s15 = scalar_lea.vmem %s15_s7, 256  ;;  %p57_p4 = scmp.lt.s32.totalorder %s15_s7, %s15_s7 }
   0x9   :  { %p53_p3 = scmp.ne.s32.totalorder %s15_s7, %s52_s15  ;;  %p58_p5 = scmp.lt.s32.totalorder %s52_s15, %s52_s15 }
   0xb   :  { %p59_p6 = por %p58_p5, %p57_p4 }
   0xd   :  { %p60_p7 = pnand %p59_p6, %p53_p3 }
   0xf   :  { %63 = shalt.err (!%p60_p7)
}
  0x10   :  { %17 = dma.hbm_to_vmem [thread:$0]  %s126_s0, 256, %s15_s7, [#allocation3]  }
  0x11   :  { %86 = dma.done.wait [#allocation3], 256  }
  0x12   :  { %87 = vsyncadd [#allocation3], 4294967040  ;;  %s91_s18 = smov [#allocation5]   ;;  %v21_v0 = vld [vmem:[#allocation2] sm:$0xff]  ;;  %v22_v1 = vld [vmem:[#allocation2 + $0x8] sm:$0xff] }
  0x13   :  { %s31_s19 = sshll.u32 %s91_s18, 4  ;;  %23 = vst [vmem:[#allocation5] sm:$0xff] %v21_v0  ;;  %24 = vst [vmem:[#allocation5 + $0x8] sm:$0xff] %v22_v1  ;;  %s32_s19 = int_to_ptr.vmem [resolvable:$true] %s31_s19 }
  0x14   :  { %s64_s20 = scalar_lea.vmem %s32_s19, 256  ;;  %p69_p9 = scmp.lt.s32.totalorder %s32_s19, %s32_s19 }
  0x15   :  { %p65_p8 = scmp.ne.s32.totalorder %s32_s19, %s64_s20  ;;  %p70_p10 = scmp.lt.s32.totalorder %s64_s20, %s64_s20 }
  0x17   :  { %p71_p11 = por %p70_p10, %p69_p9 }
  0x19   :  { %p72_p12 = pnand %p71_p11, %p65_p8 }
  0x1b   :  { %75 = shalt.err (!%p72_p12)
}
  0x1c   :  { %s76_s0 = scalar_lea.hbm %s127_s1, 256 }
  0x1d   :  { %p77_p13 = scmp.ne.s32.totalorder %s127_s1, %s76_s0  ;;  %p80_p0 = scmp.lt.u32.totalorder %s76_s0, %s127_s1 }
  0x1f   :  { %p82_p1 = pnand %p80_p0, %p77_p13 }
  0x21   :  { %85 = shalt.err (!%p82_p1)
}
  0x22   :  { %34 = dma.vmem_to_hbm [thread:$0]  %s32_s19, 256, %s127_s1, [#allocation4]  }
  0x23   :  { %88 = dma.done.wait [#allocation4], 256  }
  0x24   :  { %89 = vsyncadd [#allocation4], 4294967040 }
  0x25   :  { %38 = vsyncpa [#allocation3], 1 }
  0x26   :  { %39 = vsyncpa [#allocation4], 1 }

</bundles_post_ra>
